<compile_context>
chip_gen: v7x
topology: tpu7x:2x2x1
jax: 0.10.0
libtpu: 0.0.40
codegen_flags: <defaults>
</compile_context>

<pallas_src>
import jax
import jax.numpy as jnp
from jax.experimental import pallas as pl
from jax.experimental.pallas import tpu as pltpu

H1, H2, H3, H3_PAD = 512, 256, 150, 256


def _critic_kernel(obs_ref, acts_ref,
                   w1_ref, b1_ref,
                   w2a_ref, w2b_ref, b2_ref,
                   w3_ref, b3_ref,
                   w4_ref, b4_ref,
                   out_ref):
    mxu_dtype = w2a_ref.dtype
    obs = obs_ref[...]            # f32
    acts = acts_ref[...]          # mxu_dtype (bf16 by default)

    # fc1 + ReLU: kept fully f32 (K=48 -> one MXU pass regardless of dtype).
    x1 = jnp.dot(obs, w1_ref[...], preferred_element_type=jnp.float32) + b1_ref[...]
    x1 = jnp.maximum(x1, 0.0).astype(mxu_dtype)

    # fc2 + ReLU  (concat folded into two matmuls, f32 accumulation).
    x2 = (jnp.dot(x1, w2a_ref[...], preferred_element_type=jnp.float32)
          + jnp.dot(acts, w2b_ref[...], preferred_element_type=jnp.float32)
          + b2_ref[...])
    x2 = jnp.maximum(x2, 0.0).astype(mxu_dtype)

    # fc3 + ReLU (output lane-padded 150 -> 256; padded columns are zero).
    x3 = jnp.dot(x2, w3_ref[...], preferred_element_type=jnp.float32) + b3_ref[...]
    x3 = jnp.maximum(x3, 0.0)

    # fc4: N=1 matmul replaced by VPU multiply + XLU lane reduction.
    out_ref[...] = jnp.sum(x3 * w4_ref[...], axis=-1, keepdims=True) + b4_ref[0, 0]


def _round_up(x, m):
    return ((x + m - 1) // m) * m


def _choose_tile(batch, tile_b):
    """Batch tile: whole (sublane-rounded) batch when small; for large batches
    at least two tiles (v7x megacore) capped at tile_b (v7x VMEM headroom)."""
    if batch < 512:
        return _round_up(batch, 8)
    half = _round_up(pl.cdiv(batch, 2), 256)
    return min(tile_b, half)


def _pad_rows(x, b_pad):
    """Pad only the remainder rows (no full-array rewrite when aligned)."""
    b = x.shape[0]
    if b_pad == b:
        return x
    return jnp.pad(x, ((0, b_pad - b), (0, 0)))


def critic_forward(obs, acts, kernel_params, *, tile_b=2048, interpret=False):
    """obs: (B, obs_dim), acts: (B, act_dim) -> (B, 1) f32."""
    (w1t, b1, w2at, w2bt, b2, w3t, b3, w4row, b4) = kernel_params
    B, obs_dim = obs.shape
    act_dim = acts.shape[1]
    mxu_dtype = w2at.dtype

    tb = _choose_tile(B, tile_b)
    b_pad = _round_up(B, tb)
    n_tiles = b_pad // tb

    obs_p = _pad_rows(obs.astype(jnp.float32), b_pad)     # fc1 kept f32
    acts_p = _pad_rows(acts.astype(mxu_dtype), b_pad)

    def batch_spec(ncols):
        return pl.BlockSpec((tb, ncols), lambda i: (i, 0))

    def resident_spec(shape):
        # Same block every grid step -> stays VMEM-resident (fetched once).
        return pl.BlockSpec(shape, lambda i, _s=shape: (0,) * len(_s))

    in_specs = [
        batch_spec(obs_dim),
        batch_spec(act_dim),
        resident_spec(w1t.shape),
        resident_spec(b1.shape),
        resident_spec(w2at.shape),
        resident_spec(w2bt.shape),
        resident_spec(b2.shape),
        resident_spec(w3t.shape),
        resident_spec(b3.shape),
        resident_spec(w4row.shape),
        pl.BlockSpec(memory_space=pltpu.MemorySpace.SMEM),   # b4 scalar
    ]
    out_specs = pl.BlockSpec((tb, 1), lambda i: (i, 0))

    out_padded = pl.pallas_call(
        _critic_kernel,
        out_shape=jax.ShapeDtypeStruct((b_pad, 1), jnp.float32),
        grid_spec=pl.GridSpec(
            grid=(n_tiles,),
            in_specs=in_specs,
            out_specs=out_specs,
        ),
        compiler_params=pltpu.CompilerParams(
            dimension_semantics=("parallel",),       # shard batch tiles over TCs
            vmem_limit_bytes=32 * 1024 * 1024,       # raise v5e's 16 MiB default
        ),
        interpret=interpret,
    )(obs_p, acts_p, w1t, b1, w2at, w2bt, b2, w3t, b3, w4row, b4)

    return out_padded[:B]


def make_params(key, obs_dim, act_dim):
    """Raw f32 params (PyTorch-style uniform fan-in init), (in, out) layout."""
    ks = jax.random.split(key, 8)

    def lin(kw, kb, fan_in, fan_out):
        bound = 1.0 / jnp.sqrt(jnp.float32(fan_in))
        w = jax.random.uniform(kw, (fan_in, fan_out), jnp.float32, -bound, bound)
        b = jax.random.uniform(kb, (1, fan_out), jnp.float32, -bound, bound)
        return w, b

    w1t, b1 = lin(ks[0], ks[1], obs_dim, H1)
    w2t, b2 = lin(ks[2], ks[3], H1 + act_dim, H2)
    w3t, b3 = lin(ks[4], ks[5], H2, H3)
    w4t, b4 = lin(ks[6], ks[7], H3, 1)
    return dict(w1t=w1t, b1=b1, w2t=w2t, b2=b2, w3t=w3t, b3=b3, w4t=w4t, b4=b4)


def prepare_kernel_params(p, *, compute_dtype=jnp.bfloat16):
    """Split W2 for the folded concat, lane-pad fc3/fc4 to 256, cast fc2/fc3
    weights to the MXU compute dtype.  fc1 and fc4 stay f32 for accuracy."""
    cd = compute_dtype
    w2at, w2bt = p["w2t"][:H1, :], p["w2t"][H1:, :]
    pad3 = H3_PAD - H3
    w3t_p = jnp.pad(p["w3t"], ((0, 0), (0, pad3)))
    b3_p = jnp.pad(p["b3"], ((0, 0), (0, pad3)))
    w4row = jnp.pad(p["w4t"].reshape(1, H3), ((0, 0), (0, pad3)))   # (1, 256) f32
    b4 = p["b4"].reshape(1, 1)                                      # SMEM scalar
    return (p["w1t"], p["b1"],                       # fc1 kept f32
            w2at.astype(cd), w2bt.astype(cd), p["b2"],
            w3t_p.astype(cd), b3_p,
            w4row, b4)


def critic_ref(obs, acts, p):
    """Pure-JAX f32 reference matching the PyTorch module."""
    x1 = jax.nn.relu(obs @ p["w1t"] + p["b1"])
    comb = jnp.concatenate([x1, acts], axis=1)
    x2 = jax.nn.relu(comb @ p["w2t"] + p["b2"])
    x3 = jax.nn.relu(x2 @ p["w3t"] + p["b3"])
    return x3 @ p["w4t"] + p["b4"]


if __name__ == "__main__":
    # Small MARL-style shapes: 3 agents, per-agent obs dim 16, action dim 4.
    n_agent, dim_observation, dim_action = 3, 16, 4
    obs_dim = dim_observation * n_agent      # 48
    act_dim = dim_action * n_agent           # 12

    key = jax.random.PRNGKey(0)
    k_obs, k_act, k_par = jax.random.split(key, 3)

    raw_params = make_params(k_par, obs_dim, act_dim)
    kparams = prepare_kernel_params(raw_params, compute_dtype=jnp.bfloat16)

    # Case 1: tiny batch (single tile, whole batch).
    batch = 8
    obs = jax.random.normal(k_obs, (batch, obs_dim), jnp.float32)
    acts = jax.random.normal(k_act, (batch, act_dim), jnp.float32)
    out = jax.block_until_ready(critic_forward(obs, acts, kparams))
    ref = critic_ref(obs, acts, raw_params)
    assert out.shape == (batch, 1), out.shape
    assert jnp.allclose(out, ref, atol=5e-2, rtol=5e-2), (out, ref)

    # Case 2: larger batch exercising multi-tile grid + remainder padding.
    batch2 = 640
    obs2 = jax.random.normal(k_obs, (batch2, obs_dim), jnp.float32)
    acts2 = jax.random.normal(k_act, (batch2, act_dim), jnp.float32)
    out2 = jax.block_until_ready(critic_forward(obs2, acts2, kparams))
    ref2 = critic_ref(obs2, acts2, raw_params)
    assert out2.shape == (batch2, 1), out2.shape
    assert jnp.allclose(out2, ref2, atol=5e-2, rtol=5e-2)

    print("KERNEL_OK")
</pallas_src>

<mosaic_0001>
module attributes {stable_mosaic.version = 11 : i64} {
  func.func @_critic_kernel(%arg0: i32, %arg1: memref<8x48xf32, #tpu.memory_space<vmem>>, %arg2: memref<8x12xbf16, #tpu.memory_space<vmem>>, %arg3: memref<48x512xf32, #tpu.memory_space<vmem>>, %arg4: memref<1x512xf32, #tpu.memory_space<vmem>>, %arg5: memref<512x256xbf16, #tpu.memory_space<vmem>>, %arg6: memref<12x256xbf16, #tpu.memory_space<vmem>>, %arg7: memref<1x256xf32, #tpu.memory_space<vmem>>, %arg8: memref<256x256xbf16, #tpu.memory_space<vmem>>, %arg9: memref<1x256xf32, #tpu.memory_space<vmem>>, %arg10: memref<1x256xf32, #tpu.memory_space<vmem>>, %arg11: memref<1x1xf32, #tpu.memory_space<smem>>, %arg12: memref<8x1xf32, #tpu.memory_space<vmem>>) attributes {dimension_semantics = [#tpu.dimension_semantics<parallel>], iteration_bounds = array<i64: 1>, scalar_prefetch = 0 : i64, scratch_operands = 0 : i64, tpu.core_type = #tpu.core_type<tc>, window_params = [{transform_indices = @transform_0, window_bounds = array<i64: 8, 48>}, {transform_indices = @transform_1, window_bounds = array<i64: 8, 12>}, {pipeline_mode = #tpu.pipeline_mode<synchronous>, transform_indices = @transform_2, window_bounds = array<i64: 48, 512>}, {pipeline_mode = #tpu.pipeline_mode<synchronous>, transform_indices = @transform_3, window_bounds = array<i64: 1, 512>}, {pipeline_mode = #tpu.pipeline_mode<synchronous>, transform_indices = @transform_4, window_bounds = array<i64: 512, 256>}, {pipeline_mode = #tpu.pipeline_mode<synchronous>, transform_indices = @transform_5, window_bounds = array<i64: 12, 256>}, {pipeline_mode = #tpu.pipeline_mode<synchronous>, transform_indices = @transform_6, window_bounds = array<i64: 1, 256>}, {pipeline_mode = #tpu.pipeline_mode<synchronous>, transform_indices = @transform_7, window_bounds = array<i64: 256, 256>}, {pipeline_mode = #tpu.pipeline_mode<synchronous>, transform_indices = @transform_8, window_bounds = array<i64: 1, 256>}, {pipeline_mode = #tpu.pipeline_mode<synchronous>, transform_indices = @transform_9, window_bounds = array<i64: 1, 256>}, {transform_indices = @transform_10, window_bounds = array<i64: 1, 1>}, {transform_indices = @transform_11, window_bounds = array<i64: 8, 1>}]} {
    %c0 = arith.constant 0 : index
    %c0_0 = arith.constant 0 : index
    %0 = vector.load %arg1[%c0, %c0_0] : memref<8x48xf32, #tpu.memory_space<vmem>>, vector<8x48xf32>
    %c0_1 = arith.constant 0 : index
    %c0_2 = arith.constant 0 : index
    %1 = vector.load %arg2[%c0_1, %c0_2] : memref<8x12xbf16, #tpu.memory_space<vmem>>, vector<8x12xbf16>
    %c0_3 = arith.constant 0 : index
    %c0_4 = arith.constant 0 : index
    %2 = vector.load %arg3[%c0_3, %c0_4] : memref<48x512xf32, #tpu.memory_space<vmem>>, vector<48x512xf32>
    %cst = arith.constant dense<0.000000e+00> : vector<8x512xf32>
    %3 = tpu.matmul %0, %2, %cst {dimension_numbers = #tpu.dot_dimension_numbers<[1], [0], [0], [1], [0, 0, 1, 1], [], []>} : vector<8x48xf32>, vector<48x512xf32>, vector<8x512xf32> -> vector<8x512xf32>
    %c0_5 = arith.constant 0 : index
    %c0_6 = arith.constant 0 : index
    %4 = vector.load %arg4[%c0_5, %c0_6] : memref<1x512xf32, #tpu.memory_space<vmem>>, vector<1x512xf32>
    %5 = vector.broadcast %4 : vector<1x512xf32> to vector<8x512xf32>
    %6 = arith.addf %3, %5 : vector<8x512xf32>
    %cst_7 = arith.constant 0.000000e+00 : f32
    %7 = vector.broadcast %cst_7 : f32 to vector<8x512xf32>
    %8 = arith.maximumf %6, %7 : vector<8x512xf32>
    %9 = arith.truncf %8 : vector<8x512xf32> to vector<8x512xbf16>
    %c0_8 = arith.constant 0 : index
    %c0_9 = arith.constant 0 : index
    %10 = vector.load %arg5[%c0_8, %c0_9] : memref<512x256xbf16, #tpu.memory_space<vmem>>, vector<512x256xbf16>
    %cst_10 = arith.constant dense<0.000000e+00> : vector<8x256xf32>
    %11 = tpu.matmul %9, %10, %cst_10 {dimension_numbers = #tpu.dot_dimension_numbers<[1], [0], [0], [1], [0, 0, 1, 1], [], []>} : vector<8x512xbf16>, vector<512x256xbf16>, vector<8x256xf32> -> vector<8x256xf32>
    %c0_11 = arith.constant 0 : index
    %c0_12 = arith.constant 0 : index
    %12 = vector.load %arg6[%c0_11, %c0_12] : memref<12x256xbf16, #tpu.memory_space<vmem>>, vector<12x256xbf16>
    %cst_13 = arith.constant dense<0.000000e+00> : vector<8x256xf32>
    %13 = tpu.matmul %1, %12, %cst_13 {dimension_numbers = #tpu.dot_dimension_numbers<[1], [0], [0], [1], [0, 0, 1, 1], [], []>} : vector<8x12xbf16>, vector<12x256xbf16>, vector<8x256xf32> -> vector<8x256xf32>
    %14 = arith.addf %11, %13 : vector<8x256xf32>
    %c0_14 = arith.constant 0 : index
    %c0_15 = arith.constant 0 : index
    %15 = vector.load %arg7[%c0_14, %c0_15] : memref<1x256xf32, #tpu.memory_space<vmem>>, vector<1x256xf32>
    %16 = vector.broadcast %15 : vector<1x256xf32> to vector<8x256xf32>
    %17 = arith.addf %14, %16 : vector<8x256xf32>
    %cst_16 = arith.constant 0.000000e+00 : f32
    %18 = vector.broadcast %cst_16 : f32 to vector<8x256xf32>
    %19 = arith.maximumf %17, %18 : vector<8x256xf32>
    %20 = arith.truncf %19 : vector<8x256xf32> to vector<8x256xbf16>
    %c0_17 = arith.constant 0 : index
    %c0_18 = arith.constant 0 : index
    %21 = vector.load %arg8[%c0_17, %c0_18] : memref<256x256xbf16, #tpu.memory_space<vmem>>, vector<256x256xbf16>
    %cst_19 = arith.constant dense<0.000000e+00> : vector<8x256xf32>
    %22 = tpu.matmul %20, %21, %cst_19 {dimension_numbers = #tpu.dot_dimension_numbers<[1], [0], [0], [1], [0, 0, 1, 1], [], []>} : vector<8x256xbf16>, vector<256x256xbf16>, vector<8x256xf32> -> vector<8x256xf32>
    %c0_20 = arith.constant 0 : index
    %c0_21 = arith.constant 0 : index
    %23 = vector.load %arg9[%c0_20, %c0_21] : memref<1x256xf32, #tpu.memory_space<vmem>>, vector<1x256xf32>
    %24 = vector.broadcast %23 : vector<1x256xf32> to vector<8x256xf32>
    %25 = arith.addf %22, %24 : vector<8x256xf32>
    %cst_22 = arith.constant 0.000000e+00 : f32
    %26 = vector.broadcast %cst_22 : f32 to vector<8x256xf32>
    %27 = arith.maximumf %25, %26 : vector<8x256xf32>
    %c0_23 = arith.constant 0 : index
    %c0_24 = arith.constant 0 : index
    %28 = vector.load %arg10[%c0_23, %c0_24] : memref<1x256xf32, #tpu.memory_space<vmem>>, vector<1x256xf32>
    %29 = vector.broadcast %28 : vector<1x256xf32> to vector<8x256xf32>
    %30 = arith.mulf %27, %29 : vector<8x256xf32>
    %cst_25 = arith.constant dense<0.000000e+00> : vector<8xf32>
    %31 = vector.multi_reduction <add>, %30, %cst_25 [1] : vector<8x256xf32> to vector<8xf32>
    %32 = vector.shape_cast %31 : vector<8xf32> to vector<8x1xf32>
    %c0_26 = arith.constant 0 : index
    %c0_27 = arith.constant 0 : index
    %33 = memref.load %arg11[%c0_26, %c0_27] : memref<1x1xf32, #tpu.memory_space<smem>>
    %34 = vector.broadcast %33 : f32 to vector<8x1xf32>
    %35 = arith.addf %32, %34 : vector<8x1xf32>
    %c0_28 = arith.constant 0 : index
    %c0_29 = arith.constant 0 : index
    %36 = vector.load %arg12[%c0_28, %c0_29] : memref<8x1xf32, #tpu.memory_space<vmem>>, vector<8x1xf32>
    tpu.vector_store %arg12[%c0_28, %c0_29], %35 {strides = array<i32>} : memref<8x1xf32, #tpu.memory_space<vmem>>, vector<8x1xf32>,
    return
  }
  func.func @transform_0(%arg0: i32) -> (i32, i32) {
    %c0_i32 = arith.constant 0 : i32
    %c0_i32_0 = arith.constant 0 : i32
    return %arg0, %c0_i32 : i32, i32
  }
  func.func @transform_1(%arg0: i32) -> (i32, i32) {
    %c0_i32 = arith.constant 0 : i32
    %c0_i32_0 = arith.constant 0 : i32
    return %arg0, %c0_i32 : i32, i32
  }
  func.func @transform_2(%arg0: i32) -> (i32, i32) {
    %c0_i32 = arith.constant 0 : i32
    %c0_i32_0 = arith.constant 0 : i32
    %c0_i32_1 = arith.constant 0 : i32
    return %c0_i32, %c0_i32_0 : i32, i32
  }
  func.func @transform_3(%arg0: i32) -> (i32, i32) {
    %c0_i32 = arith.constant 0 : i32
    %c0_i32_0 = arith.constant 0 : i32
    %c0_i32_1 = arith.constant 0 : i32
    return %c0_i32, %c0_i32_0 : i32, i32
  }
  func.func @transform_4(%arg0: i32) -> (i32, i32) {
    %c0_i32 = arith.constant 0 : i32
    %c0_i32_0 = arith.constant 0 : i32
    %c0_i32_1 = arith.constant 0 : i32
    return %c0_i32, %c0_i32_0 : i32, i32
  }
  func.func @transform_5(%arg0: i32) -> (i32, i32) {
    %c0_i32 = arith.constant 0 : i32
    %c0_i32_0 = arith.constant 0 : i32
    %c0_i32_1 = arith.constant 0 : i32
    return %c0_i32, %c0_i32_0 : i32, i32
  }
  func.func @transform_6(%arg0: i32) -> (i32, i32) {
    %c0_i32 = arith.constant 0 : i32
    %c0_i32_0 = arith.constant 0 : i32
    %c0_i32_1 = arith.constant 0 : i32
    return %c0_i32, %c0_i32_0 : i32, i32
  }
  func.func @transform_7(%arg0: i32) -> (i32, i32) {
    %c0_i32 = arith.constant 0 : i32
    %c0_i32_0 = arith.constant 0 : i32
    %c0_i32_1 = arith.constant 0 : i32
    return %c0_i32, %c0_i32_0 : i32, i32
  }
  func.func @transform_8(%arg0: i32) -> (i32, i32) {
    %c0_i32 = arith.constant 0 : i32
    %c0_i32_0 = arith.constant 0 : i32
    %c0_i32_1 = arith.constant 0 : i32
    return %c0_i32, %c0_i32_0 : i32, i32
  }
  func.func @transform_9(%arg0: i32) -> (i32, i32) {
    %c0_i32 = arith.constant 0 : i32
    %c0_i32_0 = arith.constant 0 : i32
    %c0_i32_1 = arith.constant 0 : i32
    return %c0_i32, %c0_i32_0 : i32, i32
  }
  func.func @transform_10(%arg0: i32) -> (i32, i32) {
    %c0_i32 = arith.constant 0 : i32
    %c0_i32_0 = arith.constant 0 : i32
    %c0_i32_1 = arith.constant 0 : i32
    return %c0_i32, %c0_i32_0 : i32, i32
  }
  func.func @transform_11(%arg0: i32) -> (i32, i32) {
    %c0_i32 = arith.constant 0 : i32
    %c0_i32_0 = arith.constant 0 : i32
    return %arg0, %c0_i32 : i32, i32
  }
}

</mosaic_0001>

<bundles_post_ra>
// kernel: tpu_custom_call.1
= control target key start
LH: loop header
LB: loop body
LE: loop exit
PB: predicated region body
PF: predicated region fallthrough
CT: control target
= control target key end

     0   :  { %17 = vsyncpa [#allocation4], 0  ;;  %s1703_s0 = inlined_call_operand.hbm [shape: f32[8,48], index: 0, kind: input, shape index: {}]   ;;  %s1704_s1 = inlined_call_operand.vmem [shape: bf16[8,12], index: 1, kind: input, shape index: {}]   ;;  %s1705_s2 = inlined_call_operand.hbm [shape: f32[48,512], index: 2, kind: input, shape index: {}]   ;;  %s1706_s3 = inlined_call_operand.hbm [shape: f32[1,512], index: 3, kind: input, shape index: {}]   ;;  %s1707_s4 = inlined_call_operand.hbm [shape: bf16[512,256], index: 4, kind: input, shape index: {}]   ;;  %s1708_s5 = inlined_call_operand.vmem [shape: bf16[12,256], index: 5, kind: input, shape index: {}]   ;;  %s1709_s6 = inlined_call_operand.vmem [shape: f32[1,256], index: 6, kind: input, shape index: {}]   ;;  %s1710_s7 = inlined_call_operand.hbm [shape: bf16[256,256], index: 7, kind: input, shape index: {}]   ;;  %s1711_s8 = inlined_call_operand.vmem [shape: f32[1,256], index: 8, kind: input, shape index: {}]   ;;  %s1712_s9 = inlined_call_operand.vmem [shape: f32[1,256], index: 9, kind: input, shape index: {}]   ;;  %s1713_s10 = inlined_call_operand.<no memory space> [shape: f32[1,1], index: 10, kind: input, shape index: {}]   ;;  %s1714_s11 = inlined_call_operand.vmem [shape: f32[8,1], index: 11, kind: output, shape index: {}]  }
   0x1   :  { %18 = vsyncpa [#allocation6], 0 }
   0x2   :  { %19 = vsyncpa [#allocation9], 0  ;;  %s1528_s17 = smov [#allocation5]   ;;  %s1412_s21 = scalar_lea.hbm %s1705_s2, 3072 }
   0x3   :  { %s37_s18 = sshll.u32 %s1528_s17, 4  ;;  %p1413_p0 = scmp.ne.s32.totalorder %s1705_s2, %s1412_s21  ;;  %s38_s18 = int_to_ptr.vmem [resolvable:$true] %s37_s18 }
   0x4   :  { %p1416_p1 = scmp.lt.u32.totalorder %s1412_s21, %s1705_s2 }
   0x6   :  { %p1418_p2 = pnand %p1416_p1, %p1413_p0 }
   0x8   :  { %1421 = shalt.err (!%p1418_p2)
}
   0x9   :  { %s1422_s26 = scalar_lea.vmem %s38_s18, 3072  ;;  %p1427_p4 = scmp.lt.s32.totalorder %s38_s18, %s38_s18 }
   0xa   :  { %p1423_p3 = scmp.ne.s32.totalorder %s38_s18, %s1422_s26  ;;  %p1428_p5 = scmp.lt.s32.totalorder %s1422_s26, %s1422_s26 }
   0xc   :  { %p1429_p6 = por %p1428_p5, %p1427_p4 }
   0xe   :  { %p1430_p7 = pnand %p1429_p6, %p1423_p3 }
  0x10   :  { %1433 = shalt.err (!%p1430_p7)
}
  0x11   :  { %s1529_s27 = smov 512   ;;  %s1530_s28 = smov 32  }
  0x12   :  { %43 = dma.hbm_to_vmem [thread:$0]  %s1705_s2, 3072, %s38_s18, [#allocation6], %s1529_s27, %s1529_s27, %s1530_s28  }
  0x13   :  { %s1531_s12 = smov [#allocation8]   ;;  %s1434_s16 = scalar_lea.hbm %s1707_s4, 8192 }
  0x14   :  { %s59_s13 = sshll.u32 %s1531_s12, 4  ;;  %p1435_p8 = scmp.ne.s32.totalorder %s1707_s4, %s1434_s16  ;;  %s60_s13 = int_to_ptr.vmem [resolvable:$true] %s59_s13 }
  0x15   :  { %p1438_p9 = scmp.lt.u32.totalorder %s1434_s16, %s1707_s4 }
  0x17   :  { %p1440_p10 = pnand %p1438_p9, %p1435_p8 }
  0x19   :  { %1443 = shalt.err (!%p1440_p10)
}
  0x1a   :  { %s1444_s22 = scalar_lea.vmem %s60_s13, 8192  ;;  %p1449_p12 = scmp.lt.s32.totalorder %s60_s13, %s60_s13 }
  0x1b   :  { %p1445_p11 = scmp.ne.s32.totalorder %s60_s13, %s1444_s22  ;;  %p1450_p13 = scmp.lt.s32.totalorder %s1444_s22, %s1444_s22 }
  0x1d   :  { %p1451_p0 = por %p1450_p13, %p1449_p12 }
  0x1f   :  { %p1452_p1 = pnand %p1451_p0, %p1445_p11 }
  0x21   :  { %1455 = shalt.err (!%p1452_p1)
}
  0x22   :  { %s1532_s2 = smov 128   ;;  %s1533_s18 = smov 8  }
  0x23   :  { %65 = dma.hbm_to_vmem [thread:$0]  %s1707_s4, 8192, %s60_s13, [#allocation9], %s1532_s2, %s1532_s2, %s1533_s18  }
  0x24   :  { %s1534_s25 = smov [#allocation3]   ;;  %s1535_s27 = smov [#allocation7]  }
  0x25   :  { %s26_s26 = sshll.u32 %s1534_s25, 4  ;;  %s50_s28 = sshll.u32 %s1535_s27, 4  ;;  %s27_s26 = int_to_ptr.vmem [resolvable:$true] %s26_s26  ;;  %s51_s28 = int_to_ptr.vmem [resolvable:$true] %s50_s28 }
  0x26   :  { %s1456_s12 = scalar_lea.hbm %s1703_s0, 128 }
  0x27   :  { %p1457_p2 = scmp.ne.s32.totalorder %s1703_s0, %s1456_s12  ;;  %p1460_p3 = scmp.lt.u32.totalorder %s1456_s12, %s1703_s0 }
  0x29   :  { %p1462_p4 = pnand %p1460_p3, %p1457_p2 }
  0x2b   :  { %1465 = shalt.err (!%p1462_p4)
}
  0x2c   :  { %s1466_s4 = scalar_lea.vmem %s27_s26, 128  ;;  %p1471_p6 = scmp.lt.s32.totalorder %s27_s26, %s27_s26 }
  0x2d   :  { %p1467_p5 = scmp.ne.s32.totalorder %s27_s26, %s1466_s4  ;;  %p1472_p7 = scmp.lt.s32.totalorder %s1466_s4, %s1466_s4 }
  0x2f   :  { %p1473_p8 = por %p1472_p7, %p1471_p6 }
  0x31   :  { %p1474_p9 = pnand %p1473_p8, %p1467_p5 }
  0x33   :  { %1477 = shalt.err (!%p1474_p9)
}
  0x34   :  { %29 = dma.hbm_to_vmem [thread:$0]  %s1703_s0, 128, %s27_s26, [#allocation4]  }
  0x35   :  { %s1478_s22 = scalar_lea.hbm %s1706_s3, 64 }
  0x36   :  { %p1479_p10 = scmp.ne.s32.totalorder %s1706_s3, %s1478_s22  ;;  %p1482_p11 = scmp.lt.u32.totalorder %s1478_s22, %s1706_s3 }
  0x38   :  { %p1484_p12 = pnand %p1482_p11, %p1479_p10 }
  0x3a   :  { %1487 = shalt.err (!%p1484_p12)
}
  0x3b   :  { %s1488_s29 = scalar_lea.vmem %s51_s28, 64  ;;  %p1493_p0 = scmp.lt.s32.totalorder %s51_s28, %s51_s28 }
  0x3c   :  { %p1489_p13 = scmp.ne.s32.totalorder %s51_s28, %s1488_s29  ;;  %p1494_p1 = scmp.lt.s32.totalorder %s1488_s29, %s1488_s29 }
  0x3e   :  { %p1495_p2 = por %p1494_p1, %p1493_p0 }
  0x40   :  { %p1496_p3 = pnand %p1495_p2, %p1489_p13 }
  0x42   :  { %1499 = shalt.err (!%p1496_p3)
}
  0x43   :  { %53 = dma.hbm_to_vmem [thread:$0]  %s1706_s3, 64, %s51_s28, [#allocation6]  }
  0x44   :  { %s1536_s30 = smov [#allocation10]   ;;  %s1500_s16 = scalar_lea.hbm %s1710_s7, 4096 }
  0x45   :  { %s75_s12 = sshll.u32 %s1536_s30, 4  ;;  %p1501_p4 = scmp.ne.s32.totalorder %s1710_s7, %s1500_s16  ;;  %s76_s12 = int_to_ptr.vmem [resolvable:$true] %s75_s12 }
  0x46   :  { %p1504_p5 = scmp.lt.u32.totalorder %s1500_s16, %s1710_s7 }
  0x48   :  { %p1506_p6 = pnand %p1504_p5, %p1501_p4 }
  0x4a   :  { %1509 = shalt.err (!%p1506_p6)
}
  0x4b   :  { %s1510_s20 = scalar_lea.vmem %s76_s12, 4096  ;;  %p1515_p8 = scmp.lt.s32.totalorder %s76_s12, %s76_s12 }
  0x4c   :  { %p1511_p7 = scmp.ne.s32.totalorder %s76_s12, %s1510_s20  ;;  %p1516_p9 = scmp.lt.s32.totalorder %s1510_s20, %s1510_s20 }
  0x4e   :  { %p1517_p10 = por %p1516_p9, %p1515_p8 }
  0x50   :  { %p1518_p11 = pnand %p1517_p10, %p1511_p7 }
  0x52   :  { %1521 = shalt.err (!%p1518_p11)
}
  0x53   :  { %81 = dma.hbm_to_vmem [thread:$0]  %s1710_s7, 4096, %s76_s12, [#allocation9], %s1532_s2, %s1532_s2, %s1533_s18  }
  0x54   :  { %1522 = dma.done.wait [#allocation4], 128  }
  0x55   :  { %1523 = vsyncadd [#allocation4], 4294967168 }
  0x56   :  { %1524 = dma.done.wait [#allocation6], 3136  }
  0x57   :  { %1525 = vsyncadd [#allocation6], 4294964160 }
  0x58   :  { %1526 = dma.done.wait [#allocation9], 12288  }
  0x59   :  { %1527 = vsyncadd [#allocation9], 4294955008  ;;  %v1537_v0 = vmov 0.0   ;;  %v107_v1 = vld [vmem:[#allocation5 + $0x8] sm:$0xff]  ;;  %v106_v3 = vld [vmem:[#allocation5] sm:$0xff]  ;;  %vm152_vm0 = vcmask 392192  }
  0x5a   :  { %220 = vmatprep.mubr.f32.mxu0 %v1537_v0  ;;  %v111_v2 = vld [vmem:[#allocation5 + $0x28] sm:$0xff]  ;;  %v110_v5 = vld [vmem:[#allocation5 + $0x20] sm:$0xff]  ;;  %v109_v18 = vld [vmem:[#allocation5 + $0x18] sm:$0xff]  ;;  %vm384_vm1 = vcmask 1045504   ;;  %v1538_v54 = vmov 0   ;;  %vm380_vm2 = vcmask 97280  }
  0x5b   :  { %v1230_v4 = vpack.c.bf16 %v111_v2, %v107_v1  ;;  %v115_v6 = vld [vmem:[#allocation5 + $0x48] sm:$0xff]  ;;  %v1232_v8 = vpack.c.bf16 %v110_v5, %v106_v3  ;;  %v114_v10 = vld [vmem:[#allocation5 + $0x40] sm:$0xff]  ;;  %v113_v19 = vld [vmem:[#allocation5 + $0x38] sm:$0xff]  ;;  %vm1119_vm3 = vcmask 7168  }
  0x5c   :  { %v119_v7 = vld [vmem:[#allocation5 + $0x68] sm:$0xff]  ;;  %v118_v11 = vld [vmem:[#allocation5 + $0x60] sm:$0xff]  ;;  %v108_v20 = vld [vmem:[#allocation5 + $0x10] sm:$0xff]  ;;  %v1242_v24 = vpack.c.bf16 %v113_v19, %v109_v18 }
  0x5d   :  { %v1234_v9 = vpack.c.bf16 %v119_v7, %v115_v6  ;;  %v123_v12 = vld [vmem:[#allocation5 + $0x88] sm:$0xff]  ;;  %1231 = vmatprep.subr.bf16.mxu0 %v1230_v4  ;;  %v1236_v14 = vpack.c.bf16 %v118_v11, %v114_v10  ;;  %v122_v16 = vld [vmem:[#allocation5 + $0x80] sm:$0xff]  ;;  %v112_v21 = vld [vmem:[#allocation5 + $0x30] sm:$0xff] }
  0x5e   :  { %v127_v13 = vld [vmem:[#allocation5 + $0xa8] sm:$0xff]  ;;  %1233 = vmatpush1.bf16.msra.mxu0 %v1232_v8  ;;  %v126_v17 = vld [vmem:[#allocation5 + $0xa0] sm:$0xff]  ;;  %v117_v23 = vld [vmem:[#allocation5 + $0x58] sm:$0xff]  ;;  %v1244_v31 = vpack.c.bf16 %v112_v21, %v108_v20 }
  0x5f   :  { %1235 = vmatprep.subr.bf16.mxu0 %v1234_v9  ;;  %v1238_v15 = vpack.c.bf16 %v127_v13, %v123_v12  ;;  %v1240_v22 = vpack.c.bf16 %v126_v17, %v122_v16  ;;  %v1265_v25 = vld [vmem:[#allocation8 + $0x4] ss:$8 sps:$4 sm:$0xff]   ;;  %v1267_v26 = vld [vmem:[#allocation8] ss:$8 sps:$4 sm:$0xff]   ;;  %v104_v27 = vld [vmem:[#allocation3] sm:$0xff] }
  0x60   :  { %v121_v28 = vld [vmem:[#allocation5 + $0x78] sm:$0xff]  ;;  %v116_v30 = vld [vmem:[#allocation5 + $0x50] sm:$0xff]  ;;  %752 = vmatprep.subr.bf16.mxu1 %v1265_v25  ;;  %v1276_v42 = vld [vmem:[#allocation8 + $0x20] ss:$8 sps:$4 sm:$0xff]  }
  0x61   :  { %v1268_v29 = vld [vmem:[#allocation8 + $0x14] ss:$8 sps:$4 sm:$0xff]   ;;  %v120_v32 = vld [vmem:[#allocation5 + $0x70] sm:$0xff]  ;;  %753 = vmatpush1.bf16.msra.mxu1 %v1267_v26  ;;  %v1246_v33 = vpack.c.bf16 %v121_v28, %v117_v23  ;;  %v1271_v45 = vld [vmem:[%s1708_s5 + $0x4] ss:$8 sps:$4 sm:$0x3f]  }
  0x62   :  { %1237 = vmatpush1.bf16.msra.mxu0 %v1236_v14  ;;  %v125_v34 = vld [vmem:[#allocation5 + $0x98] sm:$0xff]  ;;  %754 = vmatprep.subr.bf16.mxu1 %v1268_v29  ;;  %v1274_v37 = vld [vmem:[#allocation8 + $0x24] ss:$8 sps:$4 sm:$0xff]   ;;  %v1248_v38 = vpack.c.bf16 %v120_v32, %v116_v30  ;;  %v1288_v51 = vld [vmem:[#allocation8 + $0x40] ss:$8 sps:$4 sm:$0xff]  }
  0x63   :  { %1239 = vmatprep.subr.bf16.mxu0 %v1238_v15  ;;  %v129_v35 = vld [vmem:[#allocation5 + $0xb8] sm:$0xff]  ;;  %v124_v39 = vld [vmem:[#allocation5 + $0x90] sm:$0xff]  ;;  %v1279_v55 = vld [vmem:[#allocation8 + $0x100] ss:$8 sps:$4 sm:$0xff]  }
  0x64   :  { %v1270_v36 = vld [vmem:[#allocation8 + $0x10] ss:$8 sps:$4 sm:$0xff]   ;;  %v1250_v41 = vpack.c.bf16 %v129_v35, %v125_v34  ;;  %v1277_v43 = vld [vmem:[#allocation8 + $0x34] ss:$8 sps:$4 sm:$0xff]   ;;  %v1283_v48 = vld [vmem:[#allocation8 + $0x44] ss:$8 sps:$4 sm:$0xff]  }
  0x65   :  { %v128_v40 = vld [vmem:[#allocation5 + $0xb0] sm:$0xff]  ;;  %755 = vmatpush1.bf16.msra.mxu1 %v1270_v36  ;;  %v1273_v46 = vld [vmem:[%s1708_s5] ss:$8 sps:$4 sm:$0x3f]   ;;  %v1300_v61 = vld [vmem:[#allocation8 + $0x60] ss:$8 sps:$4 sm:$0xff]  }
  0x66   :  { %1241 = vmatpush1.bf16.msra.mxu0 %v1240_v22  ;;  %756 = vmatprep.subr.bf16.mxu1 %v1274_v37  ;;  %v1252_v44 = vpack.c.bf16 %v128_v40, %v124_v39  ;;  %v1282_v47 = vld [vmem:[#allocation8 + $0x30] ss:$8 sps:$4 sm:$0xff]   ;;  %v1281_v49 = vld [vmem:[#allocation8 + $0x104] ss:$8 sps:$4 sm:$0xff]   ;;  %v386_v50 = vsel %vm384_vm1, %v1273_v46, 0 }
  0x67   :  { %1243 = vmatprep.subr.bf16.mxu0 %v1242_v24  ;;  %v1289_v52 = vld [vmem:[#allocation8 + $0x54] ss:$8 sps:$4 sm:$0xff]   ;;  %v1294_v57 = vld [vmem:[#allocation8 + $0x50] ss:$8 sps:$4 sm:$0xff]   ;;  %v1295_v58 = vld [vmem:[#allocation8 + $0x64] ss:$8 sps:$4 sm:$0xff]  }
  0x68   :  { %v105_v53 = vld [vmem:[%s1704_s1] sm:$0xf]  ;;  %v1285_v59 = vld [vmem:[#allocation8 + $0x110] ss:$8 sps:$4 sm:$0xff]   ;;  %v1293_v60 = vld [vmem:[#allocation8 + $0x124] ss:$8 sps:$4 sm:$0xff]  }
  0x69   :  { %1128 = vmatmul.mubr.msk.f32.vlgmr.msra.gmra.mrb[0].mxu0 %vm152_vm0, %v104_v27  ;;  %757 = vmatpush1.bf16.msra.mxu1 %v1276_v42  ;;  %v1287_v56 = vld [vmem:[#allocation8 + $0x114] ss:$8 sps:$4 sm:$0xff]   ;;  %v1291_v63 = vld [vmem:[#allocation8 + $0x120] ss:$8 sps:$4 sm:$0xff]   ;;  %v1306_v1 = vld [vmem:[#allocation8 + $0x70] ss:$8 sps:$4 sm:$0xff]  }
  0x6a   :  { %1245 = vmatpush1.bf16.msra.mxu0 %v1244_v31  ;;  %291 = vmatprep.mubr.f32.mxu0 %v1537_v0  ;;  %v1301_v62 = vld [vmem:[#allocation8 + $0x74] ss:$8 sps:$4 sm:$0xff]   ;;  %v1307_v2 = vld [vmem:[#allocation8 + $0x84] ss:$8 sps:$4 sm:$0xff]   ;;  %v1297_v3 = vld [vmem:[#allocation8 + $0x130] ss:$8 sps:$4 sm:$0xff]  }
  0x6b   :  { %1247 = vmatprep.subr.bf16.mxu0 %v1246_v33  ;;  %758 = vmatprep.subr.bf16.mxu1 %v1277_v43  ;;  %v1299_v0 = vld [vmem:[#allocation8 + $0x134] ss:$8 sps:$4 sm:$0xff]   ;;  %v1305_v4 = vld [vmem:[#allocation8 + $0x144] ss:$8 sps:$4 sm:$0xff]   ;;  %v1312_v5 = vld [vmem:[#allocation8 + $0x80] ss:$8 sps:$4 sm:$0xff]  }
  0x6c   :  { %v1303_v6 = vld [vmem:[#allocation8 + $0x140] ss:$8 sps:$4 sm:$0xff]   ;;  %v1313_v7 = vld [vmem:[#allocation8 + $0x94] ss:$8 sps:$4 sm:$0xff]   ;;  %v1318_v9 = vld [vmem:[#allocation8 + $0x90] ss:$8 sps:$4 sm:$0xff]  }
  0x6d   :  { %759 = vmatpush1.bf16.msra.mxu1 %v1282_v47  ;;  %v1311_v8 = vld [vmem:[#allocation8 + $0x154] ss:$8 sps:$4 sm:$0xff]   ;;  %v1319_v10 = vld [vmem:[#allocation8 + $0xa4] ss:$8 sps:$4 sm:$0xff]   ;;  %v1309_v11 = vld [vmem:[#allocation8 + $0x150] ss:$8 sps:$4 sm:$0xff]  }
  0x6e   :  { %1249 = vmatpush1.bf16.msra.mxu0 %v1248_v38  ;;  %760 = vmatprep.subr.bf16.mxu1 %v1283_v48  ;;  %v1317_v12 = vld [vmem:[#allocation8 + $0x164] ss:$8 sps:$4 sm:$0xff]   ;;  %v1324_v13 = vld [vmem:[#allocation8 + $0xa0] ss:$8 sps:$4 sm:$0xff]   ;;  %v1325_v14 = vld [vmem:[#allocation8 + $0xb4] ss:$8 sps:$4 sm:$0xff]  }
  0x6f   :  { %1251 = vmatprep.subr.bf16.mxu0 %v1250_v41  ;;  %v1315_v15 = vld [vmem:[#allocation8 + $0x160] ss:$8 sps:$4 sm:$0xff]   ;;  %v1323_v16 = vld [vmem:[#allocation8 + $0x174] ss:$8 sps:$4 sm:$0xff]   ;;  %v1330_v17 = vld [vmem:[#allocation8 + $0xb0] ss:$8 sps:$4 sm:$0xff]  }
  0x70   :  { %v1331_v18 = vld [vmem:[#allocation8 + $0xc4] ss:$8 sps:$4 sm:$0xff]   ;;  %v1321_v19 = vld [vmem:[#allocation8 + $0x170] ss:$8 sps:$4 sm:$0xff]   ;;  %v1336_v21 = vld [vmem:[#allocation8 + $0xc0] ss:$8 sps:$4 sm:$0xff]  }
  0x71   :  { %761 = vmatpush1.bf16.msra.mxu1 %v1288_v51  ;;  %v1329_v20 = vld [vmem:[#allocation8 + $0x184] ss:$8 sps:$4 sm:$0xff]   ;;  %v1337_v22 = vld [vmem:[#allocation8 + $0xd4] ss:$8 sps:$4 sm:$0xff]   ;;  %v1327_v23 = vld [vmem:[#allocation8 + $0x180] ss:$8 sps:$4 sm:$0xff]  }
  0x72   :  { %1253 = vmatpush1.bf16.msra.mxu0 %v1252_v44  ;;  %762 = vmatprep.subr.bf16.mxu1 %v1289_v52  ;;  %v1335_v24 = vld [vmem:[#allocation8 + $0x194] ss:$8 sps:$4 sm:$0xff]   ;;  %v1342_v25 = vld [vmem:[#allocation8 + $0xd0] ss:$8 sps:$4 sm:$0xff]   ;;  %v1339_v28 = vld [vmem:[#allocation8 + $0x1a0] ss:$8 sps:$4 sm:$0xff]   ;;  %v132_v44 = vlaneseq }
  0x73   :  { %1132 = vmatprep.subr.msk.bf16.mxu0 %vm384_vm1, %v1271_v45  ;;  %v1333_v26 = vld [vmem:[#allocation8 + $0x190] ss:$8 sps:$4 sm:$0xff]   ;;  %v1343_v29 = vld [vmem:[#allocation8 + $0xe4] ss:$8 sps:$4 sm:$0xff]   ;;  %v1347_v30 = vld [vmem:[#allocation8 + $0x1b4] ss:$8 sps:$4 sm:$0xff]  }
  0x74   :  { %v1345_v31 = vld [vmem:[#allocation8 + $0x1b0] ss:$8 sps:$4 sm:$0xff]   ;;  %v1348_v32 = vld [vmem:[#allocation8 + $0xe0] ss:$8 sps:$4 sm:$0xff]   ;;  %v1349_v33 = vld [vmem:[#allocation8 + $0xf4] ss:$8 sps:$4 sm:$0xff]  }
  0x75   :  { %1129 = vmatmul.mubr.msk.f32.vlgmr.msra.gmra.mrb[2].mxu0 %vm152_vm0, %v104_v27  ;;  %763 = vmatpush1.bf16.msra.mxu1 %v1294_v57  ;;  %v1341_v27 = vld [vmem:[#allocation8 + $0x1a4] ss:$8 sps:$4 sm:$0xff]   ;;  %v1351_v35 = vld [vmem:[#allocation8 + $0x1c0] ss:$8 sps:$4 sm:$0xff]   ;;  %v1354_v36 = vld [vmem:[#allocation8 + $0xf0] ss:$8 sps:$4 sm:$0xff]  }
  0x76   :  { %392 = vmatpush1.bf16.msra.mxu0 %v386_v50  ;;  %423 = vmatprep.mubr.bf16.mxu0 %v1538_v54  ;;  %v1353_v34 = vld [vmem:[#allocation8 + $0x1c4] ss:$8 sps:$4 sm:$0xff]   ;;  %v1357_v37 = vld [vmem:[#allocation8 + $0x1d4] ss:$8 sps:$4 sm:$0xff]   ;;  %v1355_v38 = vld [vmem:[#allocation8 + $0x1d0] ss:$8 sps:$4 sm:$0xff]  }
  0x77   :  { %793 = vmatprep.subr.bf16.mxu0 %v1281_v49  ;;  %764 = vmatprep.subr.bf16.mxu1 %v1295_v58  ;;  %v1360_v39 = vld [vmem:[#allocation8 + $0x1e4] ss:$8 sps:$4 sm:$0xff]   ;;  %v1358_v40 = vld [vmem:[#allocation8 + $0x1e0] ss:$8 sps:$4 sm:$0xff]   ;;  %v1363_v41 = vld [vmem:[#allocation8 + $0x1f4] ss:$8 sps:$4 sm:$0xff]  }
  0x78   :  { %v1361_v42 = vld [vmem:[#allocation8 + $0x1f0] ss:$8 sps:$4 sm:$0xff]   ;;  %v1366_v43 = vld [vmem:[#allocation10 + $0x4] ss:$8 sps:$4 sm:$0xff]   ;;  %v133_v45 = vshrl.u32 %v132_v44, 7 }
  0x79   :  { %1133 = vmatmul.mubr.msk.bf16.vlgmr.msra.gmra.mrb[4].mxu0 %vm380_vm2, %v105_v53  ;;  %765 = vmatpush1.bf16.msra.mxu1 %v1300_v61  ;;  %v130_v47 = vld [vmem:[#allocation7] sm:$0xf]  ;;  %v1364_v61 = vld [vmem:[#allocation10] ss:$8 sps:$4 sm:$0xff]  }
  0x7a   :  { %794 = vmatpush1.bf16.msra.mxu0 %v1279_v55  ;;  %766 = vmatprep.subr.bf16.mxu1 %v1301_v62  ;;  %v1676_v46 = vsub.s32 0, %v133_v45  ;;  %v1678_v48 = vsub.s32 1, %v133_v45  ;;  %v142_v58 = vsub.s32 2, %v133_v45  ;;  %v1369_v62 = vld [vmem:[#allocation10 + $0x14] ss:$8 sps:$4 sm:$0xff]  }
  0x7b   :  { %795 = vmatprep.subr.bf16.mxu0 %v1287_v56 }
  0x7c   :  { %v135_v49 = vrot.slane %v130_v47, %v1676_v46  ;;  %v139_v50 = vrot.slane %v130_v47, %v1678_v48 }
  0x7d   :  { %767 = vmatpush1.bf16.msra.mxu1 %v1306_v1  ;;  %v1367_v1 = vld [vmem:[#allocation10 + $0x10] ss:$8 sps:$4 sm:$0xff]  }
  0x7e   :  { %796 = vmatpush1.bf16.msra.mxu0 %v1285_v59  ;;  %768 = vmatprep.subr.bf16.mxu1 %v1307_v2  ;;  %v1372_v2 = vld [vmem:[#allocation10 + $0x24] ss:$8 sps:$4 sm:$0xff]  }
  0x7f   :  { %797 = vmatprep.subr.bf16.mxu0 %v1293_v60  ;;  %v146_v60 = vsub.s32 3, %v133_v45 }
  0x81   :  { %769 = vmatpush1.bf16.msra.mxu1 %v1312_v5 }
  0x82   :  { %798 = vmatpush1.bf16.msra.mxu0 %v1291_v63  ;;  %770 = vmatprep.subr.bf16.mxu1 %v1313_v7  ;;  %v143_v63 = vrot.slane %v130_v47, %v142_v58  ;;  %v1370_v7 = vld [vmem:[#allocation10 + $0x20] ss:$8 sps:$4 sm:$0xff]  }
  0x83   :  { %799 = vmatprep.subr.bf16.mxu0 %v1299_v0  ;;  %v147_v0 = vrot.slane %v130_v47, %v146_v60 }
  0x85   :  { %771 = vmatpush1.bf16.msra.mxu1 %v1318_v9  ;;  %v1375_v9 = vld [vmem:[#allocation10 + $0x34] ss:$8 sps:$4 sm:$0xff]  }
  0x86   :  { %800 = vmatpush1.bf16.msra.mxu0 %v1297_v3  ;;  %772 = vmatprep.subr.bf16.mxu1 %v1319_v10 }
  0x87   :  { %801 = vmatprep.subr.bf16.mxu0 %v1305_v4 }
  0x89   :  { %773 = vmatpush1.bf16.msra.mxu1 %v1324_v13 }
  0x8a   :  { %802 = vmatpush1.bf16.msra.mxu0 %v1303_v6  ;;  %774 = vmatprep.subr.bf16.mxu1 %v1325_v14 }
  0x8b   :  { %803 = vmatprep.subr.bf16.mxu0 %v1311_v8 }
  0x8d   :  { %775 = vmatpush1.bf16.msra.mxu1 %v1330_v17 }
  0x8e   :  { %804 = vmatpush1.bf16.msra.mxu0 %v1309_v11  ;;  %776 = vmatprep.subr.bf16.mxu1 %v1331_v18  ;;  %v1378_v18 = vld [vmem:[#allocation10 + $0x44] ss:$8 sps:$4 sm:$0xff]  }
  0x8f   :  { %805 = vmatprep.subr.bf16.mxu0 %v1317_v12 }
  0x91   :  { %777 = vmatpush1.bf16.msra.mxu1 %v1336_v21  ;;  %v1379_v21 = vld [vmem:[#allocation10 + $0x50] ss:$8 sps:$4 sm:$0xff]  }
  0x92   :  { %806 = vmatpush1.bf16.msra.mxu0 %v1315_v15  ;;  %778 = vmatprep.subr.bf16.mxu1 %v1337_v22  ;;  %v1373_v15 = vld [vmem:[#allocation10 + $0x30] ss:$8 sps:$4 sm:$0xff]   ;;  %v1384_v22 = vld [vmem:[#allocation10 + $0x64] ss:$8 sps:$4 sm:$0xff]  }
  0x93   :  { %807 = vmatprep.subr.bf16.mxu0 %v1323_v16 }
  0x95   :  { %779 = vmatpush1.bf16.msra.mxu1 %v1342_v25  ;;  %v1385_v25 = vld [vmem:[#allocation10 + $0x70] ss:$8 sps:$4 sm:$0xff]  }
  0x96   :  { %808 = vmatpush1.bf16.msra.mxu0 %v1321_v19  ;;  %780 = vmatprep.subr.bf16.mxu1 %v1343_v29  ;;  %v1376_v19 = vld [vmem:[#allocation10 + $0x40] ss:$8 sps:$4 sm:$0xff]   ;;  %v1391_v29 = vld [vmem:[#allocation10 + $0x90] ss:$8 sps:$4 sm:$0xff]  }
  0x97   :  { %809 = vmatprep.subr.bf16.mxu0 %v1329_v20  ;;  %v1381_v20 = vld [vmem:[#allocation10 + $0x54] ss:$8 sps:$4 sm:$0xff]  }
  0x99   :  { %781 = vmatpush1.bf16.msra.mxu1 %v1348_v32  ;;  %v1399_v32 = vld [vmem:[#allocation10 + $0xb4] ss:$8 sps:$4 sm:$0xff]  }
  0x9a   :  { %810 = vmatpush1.bf16.msra.mxu0 %v1327_v23  ;;  %782 = vmatprep.subr.bf16.mxu1 %v1349_v33  ;;  %v1382_v23 = vld [vmem:[#allocation10 + $0x60] ss:$8 sps:$4 sm:$0xff]   ;;  %v1397_v33 = vld [vmem:[#allocation10 + $0xb0] ss:$8 sps:$4 sm:$0xff]  }
  0x9b   :  { %811 = vmatprep.subr.bf16.mxu0 %v1335_v24  ;;  %v1387_v24 = vld [vmem:[#allocation10 + $0x74] ss:$8 sps:$4 sm:$0xff]  }
  0x9d   :  { %783 = vmatpush1.bf16.msra.mxu1 %v1354_v36  ;;  %v1405_v36 = vld [vmem:[#allocation10 + $0xd4] ss:$8 sps:$4 sm:$0xff]  }
  0x9e   :  { %812 = vmatpush1.bf16.msra.mxu0 %v1333_v26  ;;  %1056 = vmatprep.subr.bf16.mxu1 %v1366_v43  ;;  %v1390_v26 = vld [vmem:[#allocation10 + $0x84] ss:$8 sps:$4 sm:$0xff]  }
  0x9f   :  { %813 = vmatprep.subr.bf16.mxu0 %v1341_v27  ;;  %v1388_v27 = vld [vmem:[#allocation10 + $0x80] ss:$8 sps:$4 sm:$0xff]  }
  0xa2   :  { %814 = vmatpush1.bf16.msra.mxu0 %v1339_v28  ;;  %v1393_v28 = vld [vmem:[#allocation10 + $0x94] ss:$8 sps:$4 sm:$0xff]  }
  0xa3   :  { %815 = vmatprep.subr.bf16.mxu0 %v1347_v30  ;;  %v1396_v30 = vld [vmem:[#allocation10 + $0xa4] ss:$8 sps:$4 sm:$0xff]  }
  0xa6   :  { %816 = vmatpush1.bf16.msra.mxu0 %v1345_v31  ;;  %v1394_v31 = vld [vmem:[#allocation10 + $0xa0] ss:$8 sps:$4 sm:$0xff]  }
  0xa7   :  { %817 = vmatprep.subr.bf16.mxu0 %v1353_v34  ;;  %v1402_v34 = vld [vmem:[#allocation10 + $0xc4] ss:$8 sps:$4 sm:$0xff]  }
  0xaa   :  { %818 = vmatpush1.bf16.msra.mxu0 %v1351_v35  ;;  %v1400_v35 = vld [vmem:[#allocation10 + $0xc0] ss:$8 sps:$4 sm:$0xff]  }
  0xab   :  { %819 = vmatprep.subr.bf16.mxu0 %v1357_v37  ;;  %v1403_v37 = vld [vmem:[#allocation10 + $0xd0] ss:$8 sps:$4 sm:$0xff]  }
  0xae   :  { %820 = vmatpush1.bf16.msra.mxu0 %v1355_v38  ;;  %v1408_v38 = vld [vmem:[#allocation10 + $0xe4] ss:$8 sps:$4 sm:$0xff]  }
  0xaf   :  { %821 = vmatprep.subr.bf16.mxu0 %v1360_v39  ;;  %v1406_v39 = vld [vmem:[#allocation10 + $0xe0] ss:$8 sps:$4 sm:$0xff]  }
  0xb2   :  { %822 = vmatpush1.bf16.msra.mxu0 %v1358_v40  ;;  %v1411_v40 = vld [vmem:[#allocation10 + $0xf4] ss:$8 sps:$4 sm:$0xff]  }
  0xb3   :  { %823 = vmatprep.subr.bf16.mxu0 %v1363_v41  ;;  %v1409_v41 = vld [vmem:[#allocation10 + $0xf0] ss:$8 sps:$4 sm:$0xff]  }
  0xb6   :  { %824 = vmatpush1.bf16.msra.mxu0 %v1361_v42 }
 0x13c   :  { %v222_v51 = vpop.f32.mrb[0].mxu0 }
 0x13d   :  { %v223_v52 = vadd.f32 %v222_v51, %v135_v49  ;;  %v224_v53 = vpop.f32.mrb[1].mxu0 }
 0x13e   :  { %v225_v54 = vadd.f32 %v224_v53, %v139_v50  ;;  %v834_v50 = vld [vmem:[%s1709_s6] sm:$0x3] }
 0x13f   :  { %v298_v55 = vmax.f32 %v223_v52, 0.0  ;;  %v839_v51 = vrot.slane %v834_v50, %v1676_v46  ;;  %v843_v53 = vrot.slane %v834_v50, %v1678_v48 }
 0x140   :  { %v299_v56 = vmax.f32 %v225_v54, 0.0 }
 0x141   :  { %v302_v57 = vpack.c.bf16 %v298_v55, %v298_v55 }
 0x142   :  { %v303_v59 = vpack.c.bf16 %v299_v56, %v299_v56 }
 0x144   :  { %784 = vmatprep.mubr.bf16.mxu1 %v303_v59 }
 0x145   :  { %785 = vmatmul.mubr.bf16.vlgmr.msra.gmra.mrb[0].mxu1 %v302_v57 }
 0x146   :  { %1057 = vmatpush1.bf16.msra.mxu1 %v1364_v61 }
 0x147   :  { %1058 = vmatprep.subr.bf16.mxu1 %v1369_v62 }
 0x148   :  { %v293_v3 = vpop.f32.mrb[2].mxu0 }
 0x149   :  { %v294_v4 = vadd.f32 %v293_v3, %v143_v63  ;;  %v295_v5 = vpop.f32.mrb[3].mxu0 }
 0x14a   :  { %v296_v6 = vadd.f32 %v295_v5, %v147_v0  ;;  %1059 = vmatpush1.bf16.msra.mxu1 %v1367_v1  ;;  %v884_v1 = vld [vmem:[%s1711_s8] sm:$0x3] }
 0x14b   :  { %v300_v8 = vmax.f32 %v294_v4, 0.0  ;;  %1060 = vmatprep.subr.bf16.mxu1 %v1372_v2  ;;  %v889_v2 = vrot.slane %v884_v1, %v1676_v46  ;;  %v893_v3 = vrot.slane %v884_v1, %v1678_v48  ;;  %v1099_v4 = vld [vmem:[%s1712_s9] sm:$0x3] }
 0x14c   :  { %v301_v10 = vmax.f32 %v296_v6, 0.0  ;;  %v425_v11 = vpop.f32.mrb[4].mxu0 }
 0x14d   :  { %v427_v12 = vpop.f32.mrb[5].mxu0  ;;  %v304_v16 = vpack.c.bf16 %v300_v8, %v300_v8  ;;  %v1104_v8 = vrot.slane %v1099_v4, %v1676_v46 }
 0x14e   :  { %v305_v13 = vpack.c.bf16 %v301_v10, %v301_v10  ;;  %v429_v14 = vpop.f32.mrb[6].mxu0  ;;  %1061 = vmatpush1.bf16.msra.mxu1 %v1370_v7 }
 0x14f   :  { %v430_v17 = vpop.f32.mrb[7].mxu0  ;;  %1062 = vmatprep.subr.bf16.mxu1 %v1375_v9 }
 0x150   :  { %825 = vmatprep.mubr.bf16.mxu0 %v305_v13 }
 0x151   :  { %826 = vmatmul.mubr.bf16.vlgmr.msra.gmra.mrb[8].mxu0 %v304_v16 }
 0x152   :  { %1063 = vmatpush1.bf16.msra.mxu1 %v1373_v15 }
 0x153   :  { %1064 = vmatprep.subr.bf16.mxu1 %v1378_v18  ;;  %v1117_v18 = vstv %s1713_s10 }
 0x156   :  { %1065 = vmatpush1.bf16.msra.mxu1 %v1376_v19 }
 0x157   :  { %1066 = vmatprep.subr.bf16.mxu1 %v1381_v20 }
 0x15a   :  { %1067 = vmatpush1.bf16.msra.mxu1 %v1379_v21 }
 0x15b   :  { %1068 = vmatprep.subr.bf16.mxu1 %v1384_v22 }
 0x15e   :  { %1069 = vmatpush1.bf16.msra.mxu1 %v1382_v23 }
 0x15f   :  { %1070 = vmatprep.subr.bf16.mxu1 %v1387_v24 }
 0x162   :  { %1071 = vmatpush1.bf16.msra.mxu1 %v1385_v25 }
 0x163   :  { %1072 = vmatprep.subr.bf16.mxu1 %v1390_v26 }
 0x166   :  { %1073 = vmatpush1.bf16.msra.mxu1 %v1388_v27 }
 0x167   :  { %1074 = vmatprep.subr.bf16.mxu1 %v1393_v28 }
 0x16a   :  { %1075 = vmatpush1.bf16.msra.mxu1 %v1391_v29 }
 0x16b   :  { %1076 = vmatprep.subr.bf16.mxu1 %v1396_v30 }
 0x16e   :  { %1077 = vmatpush1.bf16.msra.mxu1 %v1394_v31 }
 0x16f   :  { %1078 = vmatprep.subr.bf16.mxu1 %v1399_v32 }
 0x172   :  { %1079 = vmatpush1.bf16.msra.mxu1 %v1397_v33 }
 0x173   :  { %1080 = vmatprep.subr.bf16.mxu1 %v1402_v34 }
 0x176   :  { %1081 = vmatpush1.bf16.msra.mxu1 %v1400_v35 }
 0x177   :  { %1082 = vmatprep.subr.bf16.mxu1 %v1405_v36 }
 0x17a   :  { %1083 = vmatpush1.bf16.msra.mxu1 %v1403_v37 }
 0x17b   :  { %1084 = vmatprep.subr.bf16.mxu1 %v1408_v38 }
 0x17e   :  { %1085 = vmatpush1.bf16.msra.mxu1 %v1406_v39 }
 0x17f   :  { %1086 = vmatprep.subr.bf16.mxu1 %v1411_v40 }
 0x182   :  { %1087 = vmatpush1.bf16.msra.mxu1 %v1409_v41 }
 0x218   :  { %v786_v42 = vpop.f32.mrb[0].mxu1 }
 0x219   :  { %v787_v43 = vadd.f32 %v786_v42, %v425_v11  ;;  %v788_v44 = vpop.f32.mrb[1].mxu1  ;;  %v1108_v11 = vrot.slane %v1099_v4, %v1678_v48 }
 0x21a   :  { %v789_v45 = vadd.f32 %v788_v44, %v427_v12  ;;  %v790_v47 = vpop.f32.mrb[2].mxu1 }
 0x21b   :  { %v791_v49 = vpop.f32.mrb[3].mxu1 }
 0x224   :  { %v827_v52 = vpop.f32.mrb[8].mxu0 }
 0x225   :  { %v828_v54 = vadd.f32 %v827_v52, %v787_v43  ;;  %v829_v55 = vpop.f32.mrb[9].mxu0 }
 0x226   :  { %v830_v56 = vadd.f32 %v829_v55, %v789_v45  ;;  %v831_v57 = vpop.f32.mrb[10].mxu0 }
 0x227   :  { %v846_v58 = vadd.f32 %v839_v51, %v828_v54  ;;  %v832_v59 = vpop.f32.mrb[11].mxu0 }
 0x228   :  { %v847_v60 = vadd.f32 %v843_v53, %v830_v56 }
 0x229   :  { %v848_v61 = vmax.f32 %v846_v58, 0.0 }
 0x22a   :  { %v849_v62 = vmax.f32 %v847_v60, 0.0 }
 0x22b   :  { %v850_v0 = vpack.c.bf16 %v848_v61, %v848_v61 }
 0x22c   :  { %v851_v63 = vpack.c.bf16 %v849_v62, %v849_v62 }
 0x22e   :  { %1088 = vmatprep.mubr.bf16.mxu1 %v851_v63 }
 0x22f   :  { %1089 = vmatmul.mubr.bf16.vlgmr.msra.gmra.mrb[4].mxu1 %v850_v0 }
 0x302   :  { %v1090_v5 = vpop.f32.mrb[4].mxu1 }
 0x303   :  { %v1091_v6 = vadd.f32 %v1090_v5, %v889_v2  ;;  %v1092_v7 = vpop.f32.mrb[5].mxu1 }
 0x304   :  { %v1093_v9 = vadd.f32 %v1092_v7, %v893_v3  ;;  %v1094_v10 = vpop.f32.mrb[6].mxu1 }
 0x305   :  { %v1097_v12 = vmax.f32 %v1091_v6, 0.0  ;;  %v1095_v13 = vpop.f32.mrb[7].mxu1 }
 0x306   :  { %v1098_v14 = vmax.f32 %v1093_v9, 0.0 }
 0x307   :  { %v1111_v15 = vmul.f32 %v1104_v8, %v1097_v12 }
 0x308   :  { %v1112_v16 = vmul.f32 %v1108_v11, %v1098_v14 }
 0x30a   :  { %v1113_v17 = vadd.f32 %v1112_v16, %v1111_v15 }
 0x30c   :  { %1114 = vadd.xlane.f32.xlu0 %v1113_v17 }
 0x399   :  { %v1115_v19 = vpop.xlane.xlu0 %1114 }
 0x39a   :  { %v1118_v20 = vadd.f32 %v1117_v18, %v1115_v19 }
 0x39c   :  { %1120 = vst.msk [vmem:[%s1714_s11] sm:$0xff] %vm1119_vm3, %v1118_v20 }
 0x39d   :  { %1125 = vsyncpa [#allocation4], 1 }
 0x39e   :  { %1126 = vsyncpa [#allocation6], 1 }
 0x39f   :  { %1127 = vsyncpa [#allocation9], 1 }

</bundles_post_ra>
